<compile_context>
chip_gen: v7x
topology: tpu7x:2x2x1
jax: 0.10.0
libtpu: 0.0.40
codegen_flags: <defaults>
</compile_context>

<pallas_src>
import jax
import jax.numpy as jnp
from jax.experimental import pallas as pl
from jax.experimental.pallas import tpu as pltpu


def _mlp_kernel(xT_ref, w1_ref, b1_ref, w2_ref, b2_ref, o_ref):
    # xT: [D_in, TB]   w1: [H, D_in]   b1: [H, 1]
    # w2: [H, 1]       b2: [1, 1] (SMEM)   o: [1, TB]
    # Layer 1 on the MXU (f32 accumulation), transposed: h^T = W1 @ x^T.
    hT = jnp.dot(w1_ref[...], xT_ref[...], preferred_element_type=jnp.float32)
    hT = jnp.maximum(hT + b1_ref[...], 0.0)            # bias + ReLU, f32, [H, TB]
    # Layer 2 (output width 1): VPU multiply + XLU sublane reduction instead of
    # a 1-wide MXU matmul.  Result is already lane-dense: [1, TB].
    y = jnp.sum(hT * w2_ref[...], axis=0, keepdims=True)
    o_ref[...] = jnp.tanh(y + b2_ref[0, 0]).astype(o_ref.dtype)


def mlp_forward(features, w1, b1, w2, b2, *, block_b=512):
    """features: [B, D_in]; params in PyTorch layout:
       w1: [H, D_in], b1: [H], w2: [1, H], b2: [1].  Returns [B]."""
    B, D_in = features.shape
    H = w1.shape[0]

    # Lane-aligned batch tile: multiple of 128, capped at block_b.
    TB = min(block_b, 128 * pl.cdiv(B, 128))
    B_pad = TB * pl.cdiv(B, TB)

    # Zero-pad batch and transpose so the kernel's output is lane-dense.
    x_pad = jnp.pad(features, ((0, B_pad - B), (0, 0)))
    xT = x_pad.T                                        # [D_in, B_pad]

    b1_col = b1.reshape(H, 1)
    w2_col = w2.reshape(H, 1)
    b2_s = b2.reshape(1, 1)

    out = pl.pallas_call(
        _mlp_kernel,
        out_shape=jax.ShapeDtypeStruct((1, B_pad), features.dtype),
        grid_spec=pltpu.PrefetchScalarGridSpec(
            num_scalar_prefetch=0,
            grid=(B_pad // TB,),
            in_specs=[
                pl.BlockSpec((D_in, TB), lambda i: (0, i)),          # x^T tile
                pl.BlockSpec((H, D_in), lambda i: (0, 0)),           # W1 (resident)
                pl.BlockSpec((H, 1), lambda i: (0, 0)),              # b1 (resident)
                pl.BlockSpec((H, 1), lambda i: (0, 0)),              # w2 (resident)
                pl.BlockSpec(memory_space=pltpu.MemorySpace.SMEM),   # b2 scalar
            ],
            out_specs=pl.BlockSpec((1, TB), lambda i: (0, i)),
        ),
        compiler_params=pltpu.CompilerParams(
            dimension_semantics=("parallel",),
        ),
    )(xT, w1, b1_col, w2_col, b2_s)

    # torch.squeeze(x, 1): [B, 1] -> [B]  (we produced the transposed [1, B_pad]).
    return out[0, :B]


def init_params(key, input_dim, hidden_dim, dtype=jnp.float32):
    """xavier_normal_ weights + PyTorch-default uniform Linear biases,
    stored in PyTorch layout (weight = [out, in])."""
    k1, k2, k3, k4 = jax.random.split(key, 4)
    std1 = (2.0 / (input_dim + hidden_dim)) ** 0.5
    std2 = (2.0 / (hidden_dim + 1)) ** 0.5
    w1 = (jax.random.normal(k1, (hidden_dim, input_dim)) * std1).astype(dtype)
    w2 = (jax.random.normal(k2, (1, hidden_dim)) * std2).astype(dtype)
    bound1 = 1.0 / (input_dim ** 0.5)
    bound2 = 1.0 / (hidden_dim ** 0.5)
    b1 = jax.random.uniform(k3, (hidden_dim,), minval=-bound1, maxval=bound1).astype(dtype)
    b2 = jax.random.uniform(k4, (1,), minval=-bound2, maxval=bound2).astype(dtype)
    return w1, b1, w2, b2


if __name__ == "__main__":
    key = jax.random.PRNGKey(0)
    k_x, k_p = jax.random.split(key)

    batch, input_dim, hidden_dim = 8, 32, 64
    features = jax.random.normal(k_x, (batch, input_dim), dtype=jnp.float32)
    w1, b1, w2, b2 = init_params(k_p, input_dim, hidden_dim)

    out = mlp_forward(features, w1, b1, w2, b2)
    out = jax.block_until_ready(out)

    # Reference in plain JAX (matches the PyTorch forward).
    h_ref = jnp.maximum(features @ w1.T + b1, 0.0)
    ref = jnp.squeeze(jnp.tanh(h_ref @ w2.T + b2), axis=1)
    assert out.shape == (batch,), out.shape
    assert jnp.allclose(out, ref, atol=1e-5, rtol=1e-5), (out, ref)

    print("KERNEL_OK")
</pallas_src>

<mosaic_0001>
module attributes {stable_mosaic.version = 11 : i64} {
  func.func @_mlp_kernel(%arg0: i32, %arg1: memref<32x128xf32, #tpu.memory_space<vmem>>, %arg2: memref<64x32xf32, #tpu.memory_space<vmem>>, %arg3: memref<64x1xf32, #tpu.memory_space<vmem>>, %arg4: memref<64x1xf32, #tpu.memory_space<vmem>>, %arg5: memref<1x1xf32, #tpu.memory_space<smem>>, %arg6: memref<1x128xf32, #tpu.memory_space<vmem>>) attributes {dimension_semantics = [#tpu.dimension_semantics<parallel>], iteration_bounds = array<i64: 1>, scalar_prefetch = 0 : i64, scratch_operands = 0 : i64, tpu.core_type = #tpu.core_type<tc>, window_params = [{transform_indices = @transform_0, window_bounds = array<i64: 32, 128>}, {pipeline_mode = #tpu.pipeline_mode<synchronous>, transform_indices = @transform_1, window_bounds = array<i64: 64, 32>}, {pipeline_mode = #tpu.pipeline_mode<synchronous>, transform_indices = @transform_2, window_bounds = array<i64: 64, 1>}, {pipeline_mode = #tpu.pipeline_mode<synchronous>, transform_indices = @transform_3, window_bounds = array<i64: 64, 1>}, {transform_indices = @transform_4, window_bounds = array<i64: 1, 1>}, {transform_indices = @transform_5, window_bounds = array<i64: 1, 128>}]} {
    %c0 = arith.constant 0 : index
    %c0_0 = arith.constant 0 : index
    %0 = vector.load %arg2[%c0, %c0_0] : memref<64x32xf32, #tpu.memory_space<vmem>>, vector<64x32xf32>
    %c0_1 = arith.constant 0 : index
    %c0_2 = arith.constant 0 : index
    %1 = vector.load %arg1[%c0_1, %c0_2] : memref<32x128xf32, #tpu.memory_space<vmem>>, vector<32x128xf32>
    %cst = arith.constant dense<0.000000e+00> : vector<64x128xf32>
    %2 = tpu.matmul %0, %1, %cst {dimension_numbers = #tpu.dot_dimension_numbers<[1], [0], [0], [1], [0, 0, 1, 1], [], []>} : vector<64x32xf32>, vector<32x128xf32>, vector<64x128xf32> -> vector<64x128xf32>
    %c0_3 = arith.constant 0 : index
    %c0_4 = arith.constant 0 : index
    %3 = vector.load %arg3[%c0_3, %c0_4] : memref<64x1xf32, #tpu.memory_space<vmem>>, vector<64x1xf32>
    %4 = vector.broadcast %3 : vector<64x1xf32> to vector<64x128xf32>
    %5 = arith.addf %2, %4 : vector<64x128xf32>
    %cst_5 = arith.constant 0.000000e+00 : f32
    %6 = vector.broadcast %cst_5 : f32 to vector<64x128xf32>
    %7 = arith.maximumf %5, %6 : vector<64x128xf32>
    %c0_6 = arith.constant 0 : index
    %c0_7 = arith.constant 0 : index
    %8 = vector.load %arg4[%c0_6, %c0_7] : memref<64x1xf32, #tpu.memory_space<vmem>>, vector<64x1xf32>
    %9 = vector.broadcast %8 : vector<64x1xf32> to vector<64x128xf32>
    %10 = arith.mulf %7, %9 : vector<64x128xf32>
    %cst_8 = arith.constant dense<0.000000e+00> : vector<128xf32>
    %11 = vector.multi_reduction <add>, %10, %cst_8 [0] : vector<64x128xf32> to vector<128xf32>
    %12 = vector.shape_cast %11 : vector<128xf32> to vector<1x128xf32>
    %c0_9 = arith.constant 0 : index
    %c0_10 = arith.constant 0 : index
    %13 = memref.load %arg5[%c0_9, %c0_10] : memref<1x1xf32, #tpu.memory_space<smem>>
    %14 = vector.broadcast %13 : f32 to vector<1x128xf32>
    %15 = arith.addf %12, %14 : vector<1x128xf32>
    %16 = math.tanh %15 : vector<1x128xf32>
    %c0_11 = arith.constant 0 : index
    %c0_12 = arith.constant 0 : index
    %17 = vector.load %arg6[%c0_11, %c0_12] : memref<1x128xf32, #tpu.memory_space<vmem>>, vector<1x128xf32>
    tpu.vector_store %arg6[%c0_11, %c0_12], %16 {strides = array<i32>} : memref<1x128xf32, #tpu.memory_space<vmem>>, vector<1x128xf32>,
    return
  }
  func.func @transform_0(%arg0: i32) -> (i32, i32) {
    %c0_i32 = arith.constant 0 : i32
    %c0_i32_0 = arith.constant 0 : i32
    return %c0_i32, %arg0 : i32, i32
  }
  func.func @transform_1(%arg0: i32) -> (i32, i32) {
    %c0_i32 = arith.constant 0 : i32
    %c0_i32_0 = arith.constant 0 : i32
    %c0_i32_1 = arith.constant 0 : i32
    return %c0_i32, %c0_i32_0 : i32, i32
  }
  func.func @transform_2(%arg0: i32) -> (i32, i32) {
    %c0_i32 = arith.constant 0 : i32
    %c0_i32_0 = arith.constant 0 : i32
    %c0_i32_1 = arith.constant 0 : i32
    return %c0_i32, %c0_i32_0 : i32, i32
  }
  func.func @transform_3(%arg0: i32) -> (i32, i32) {
    %c0_i32 = arith.constant 0 : i32
    %c0_i32_0 = arith.constant 0 : i32
    %c0_i32_1 = arith.constant 0 : i32
    return %c0_i32, %c0_i32_0 : i32, i32
  }
  func.func @transform_4(%arg0: i32) -> (i32, i32) {
    %c0_i32 = arith.constant 0 : i32
    %c0_i32_0 = arith.constant 0 : i32
    %c0_i32_1 = arith.constant 0 : i32
    return %c0_i32, %c0_i32_0 : i32, i32
  }
  func.func @transform_5(%arg0: i32) -> (i32, i32) {
    %c0_i32 = arith.constant 0 : i32
    %c0_i32_0 = arith.constant 0 : i32
    return %c0_i32, %arg0 : i32, i32
  }
}

</mosaic_0001>

<bundles_post_ra>
// kernel: tpu_custom_call.1
= control target key start
LH: loop header
LB: loop body
LE: loop exit
PB: predicated region body
PF: predicated region fallthrough
CT: control target
= control target key end

     0   :  { %vm82_vm0 = vcmask 261120   ;;  %v390_v7 = vmov 0   ;;  %s529_s0 = inlined_call_operand.vmem [shape: f32[32,128], index: 0, kind: input, shape index: {}]   ;;  %s530_s1 = inlined_call_operand.vmem [shape: f32[64,32], index: 1, kind: input, shape index: {}]   ;;  %s531_s2 = inlined_call_operand.vmem [shape: f32[64,1], index: 2, kind: input, shape index: {}]   ;;  %s532_s3 = inlined_call_operand.vmem [shape: f32[64,1], index: 3, kind: input, shape index: {}]   ;;  %s533_s4 = inlined_call_operand.<no memory space> [shape: f32[1,1], index: 4, kind: input, shape index: {}]   ;;  %s534_s5 = inlined_call_operand.hbm [shape: f32[1,128], index: 5, kind: output, shape index: {}]  }
   0x1   :  { %v30_v0 = vld [vmem:[%s529_s0] sm:$0xff]  ;;  %v31_v1 = vld [vmem:[%s529_s0 + $0x8] sm:$0xff]  ;;  %v32_v2 = vld [vmem:[%s529_s0 + $0x10] sm:$0xff]  ;;  %362 = vset.pattern.permute.xlu0 %v390_v7  ;;  %363 = vset.pattern.permute.xlu1 %v390_v7 }
   0x2   :  { %v348_v3 = vpack.c.bf16 %v31_v1, %v30_v0  ;;  %v33_v4 = vld [vmem:[%s529_s0 + $0x18] sm:$0xff]  ;;  %v22_v5 = vld [vmem:[%s530_s1] sm:$0xff]  ;;  %v36_v10 = vld [vmem:[%s531_s2 + $0x10] sm:$0xff] }
   0x3   :  { %v26_v6 = vld [vmem:[%s530_s1 + $0x20] sm:$0xff]  ;;  %v352_v8 = vpack.c.bf16 %v33_v4, %v32_v2  ;;  %336 = vmatprep.mubr.msk.f32.mxu0 %vm82_vm0, %v22_v5  ;;  %54 = vperm.xlu1 %363, %v36_v10   ;;  %v35_v11 = vld [vmem:[%s531_s2 + $0x8] sm:$0xff]  ;;  %v37_v12 = vld [vmem:[%s531_s2 + $0x18] sm:$0xff] }
   0x4   :  { %342 = vmatprep.mubr.msk.f32.mxu1 %vm82_vm0, %v26_v6  ;;  %349 = vmatprep.subr.bf16.mxu0 %v348_v3  ;;  %v34_v9 = vld [vmem:[%s531_s2] sm:$0xff]  ;;  %v23_v13 = vld [vmem:[%s530_s1 + $0x8] sm:$0xff]  ;;  %v24_v15 = vld [vmem:[%s530_s1 + $0x10] sm:$0xff] }
   0x5   :  { %356 = vmatprep.subr.bf16.mxu1 %v348_v3  ;;  %351 = vmatpush3.bf16.msra.mxu0 %v348_v3  ;;  %v27_v14 = vld [vmem:[%s530_s1 + $0x28] sm:$0xff]  ;;  %v28_v16 = vld [vmem:[%s530_s1 + $0x30] sm:$0xff] }
   0x6   :  { %358 = vmatpush3.bf16.msra.mxu1 %v348_v3  ;;  %353 = vmatprep.subr.bf16.mxu0 %v352_v8 }
   0x7   :  { %357 = vmatprep.subr.bf16.mxu1 %v352_v8  ;;  %44 = vperm.xlu0 %362, %v34_v9  }
   0x9   :  { %355 = vmatpush3.bf16.msra.mxu0 %v352_v8 }
   0xa   :  { %359 = vmatpush3.bf16.msra.mxu1 %v352_v8 }
   0xb   :  { %11 = vsyncpa [#allocation4], 0  ;;  %49 = vperm.xlu0 %362, %v35_v11   ;;  %59 = vperm.xlu1 %363, %v37_v12   ;;  %v220_v17 = vld [vmem:[%s532_s3] sm:$0xff]  ;;  %v221_v18 = vld [vmem:[%s532_s3 + $0x8] sm:$0xff]  ;;  %s391_s21 = smov [#allocation3]  }
   0xc   :  { %337 = vmatmul.mubr.msk.f32.vlgmr.msra.gmra.mrb[0].mxu0 %vm82_vm0, %v23_v13  ;;  %v25_v19 = vld [vmem:[%s530_s1 + $0x18] sm:$0xff]  ;;  %v38_v21 = vld [vmem:[%s531_s2 + $0x20] sm:$0xff]  ;;  %v222_v22 = vld [vmem:[%s532_s3 + $0x10] sm:$0xff]  ;;  %s300_s22 = sshll.u32 %s391_s21, 4  ;;  %s301_s22 = int_to_ptr.vmem [resolvable:$true] %s300_s22 }
   0xd   :  { %343 = vmatmul.mubr.msk.f32.vlgmr.msra.gmra.mrb[0].mxu1 %vm82_vm0, %v27_v14  ;;  %339 = vmatprep.mubr.msk.f32.mxu0 %vm82_vm0, %v24_v15  ;;  %v29_v20 = vld [vmem:[%s530_s1 + $0x38] sm:$0xff]  ;;  %v39_v23 = vld [vmem:[%s531_s2 + $0x28] sm:$0xff]  ;;  %v40_v25 = vld [vmem:[%s531_s2 + $0x30] sm:$0xff]  ;;  %s366_s23 = scalar_lea.vmem %s301_s22, 16  ;;  %s370_s24 = scalar_lea.vmem %s301_s22, 32 }
   0xe   :  { %345 = vmatprep.mubr.msk.f32.mxu1 %vm82_vm0, %v28_v16  ;;  %v223_v24 = vld [vmem:[%s532_s3 + $0x18] sm:$0xff]  ;;  %v224_v26 = vld [vmem:[%s532_s3 + $0x20] sm:$0xff]  ;;  %v225_v28 = vld [vmem:[%s532_s3 + $0x28] sm:$0xff]  ;;  %p367_p0 = scmp.ne.s32.totalorder %s301_s22, %s366_s23  ;;  %p371_p1 = scmp.lt.s32.totalorder %s301_s22, %s301_s22 }
   0xf   :  { %230 = vperm.xlu0 %362, %v220_v17   ;;  %235 = vperm.xlu1 %363, %v221_v18   ;;  %v41_v27 = vld [vmem:[%s531_s2 + $0x38] sm:$0xff]  ;;  %v226_v29 = vld [vmem:[%s532_s3 + $0x30] sm:$0xff]  ;;  %p372_p2 = scmp.lt.s32.totalorder %s370_s24, %s366_s23 }
  0x10   :  { %340 = vmatmul.mubr.msk.f32.gmra.mrb[2].mxu0 %vm82_vm0, %v25_v19  ;;  %v227_v30 = vld [vmem:[%s532_s3 + $0x38] sm:$0xff] }
  0x11   :  { %346 = vmatmul.mubr.msk.f32.gmra.mrb[2].mxu1 %vm82_vm0, %v29_v20  ;;  %p373_p3 = por %p372_p2, %p371_p1 }
  0x13   :  { %64 = vperm.xlu0 %362, %v38_v21   ;;  %240 = vperm.xlu1 %363, %v222_v22   ;;  %p374_p4 = pnand %p373_p3, %p367_p0 }
  0x17   :  { %69 = vperm.xlu0 %362, %v39_v23   ;;  %245 = vperm.xlu1 %363, %v223_v24  }
  0x1b   :  { %74 = vperm.xlu0 %362, %v40_v25   ;;  %250 = vperm.xlu1 %363, %v224_v26  }
  0x1f   :  { %79 = vperm.xlu0 %362, %v41_v27   ;;  %255 = vperm.xlu1 %363, %v225_v28   ;;  %v290_v27 = vstv %s533_s4 }
  0x23   :  { %260 = vperm.xlu0 %362, %v226_v29   ;;  %265 = vperm.xlu1 %363, %v227_v30  }
  0x82   :  { %v55_v32 = vpop.permute.xlu1 %54 }
  0x86   :  { %v45_v31 = vpop.permute.xlu0 %44 }
  0x8a   :  { %v50_v33 = vpop.permute.xlu0 %49  ;;  %v60_v34 = vpop.permute.xlu1 %59 }
  0x8e   :  { %v231_v35 = vpop.permute.xlu0 %230  ;;  %v236_v36 = vpop.permute.xlu1 %235 }
  0x92   :  { %v65_v37 = vpop.permute.xlu0 %64  ;;  %v241_v38 = vpop.permute.xlu1 %240 }
  0x96   :  { %v70_v39 = vpop.permute.xlu0 %69  ;;  %v246_v40 = vpop.permute.xlu1 %245 }
  0x9a   :  { %v75_v47 = vpop.permute.xlu0 %74  ;;  %v251_v59 = vpop.permute.xlu1 %250 }
  0x9e   :  { %v80_v3 = vpop.permute.xlu0 %79  ;;  %v256_v8 = vpop.permute.xlu1 %255 }
  0xa2   :  { %v261_v15 = vpop.permute.xlu0 %260  ;;  %v266_v18 = vpop.permute.xlu1 %265 }
  0xdf   :  { %v338_v41 = vpop.f32.mrb[0].mxu0 }
  0xe0   :  { %v344_v42 = vpop.f32.mrb[0].mxu1  ;;  %v179_v43 = vadd.f32 %v338_v41, %v50_v33  ;;  %v173_v44 = vpop.f32.mrb[1].mxu0 }
  0xe1   :  { %v193_v45 = vpop.f32.mrb[1].mxu1  ;;  %v174_v46 = vadd.f32 %v173_v44, %v45_v31  ;;  %v199_v60 = vadd.f32 %v344_v42, %v70_v39 }
  0xe2   :  { %v213_v48 = vmax.f32 %v179_v43, 0.0  ;;  %v194_v57 = vadd.f32 %v193_v45, %v65_v37 }
  0xe3   :  { %v212_v49 = vmax.f32 %v174_v46, 0.0  ;;  %v341_v50 = vpop.f32.mrb[2].mxu0  ;;  %v217_v4 = vmax.f32 %v199_v60, 0.0 }
  0xe4   :  { %v347_v51 = vpop.f32.mrb[2].mxu1  ;;  %v269_v52 = vmul.f32 %v236_v36, %v213_v48  ;;  %v189_v53 = vadd.f32 %v341_v50, %v60_v34  ;;  %v183_v54 = vpop.f32.mrb[3].mxu0  ;;  %v216_v0 = vmax.f32 %v194_v57, 0.0 }
  0xe5   :  { %v203_v55 = vpop.f32.mrb[3].mxu1  ;;  %v268_v56 = vmul.f32 %v231_v35, %v212_v49  ;;  %v184_v58 = vadd.f32 %v183_v54, %v55_v32  ;;  %v209_v6 = vadd.f32 %v347_v51, %v80_v3  ;;  %v273_v12 = vmul.f32 %v256_v8, %v217_v4 }
  0xe6   :  { %v215_v62 = vmax.f32 %v189_v53, 0.0  ;;  %v204_v2 = vadd.f32 %v203_v55, %v75_v47  ;;  %v272_v9 = vmul.f32 %v251_v59, %v216_v0 }
  0xe7   :  { %v276_v61 = vadd.f32 %v269_v52, %v268_v56  ;;  %v214_v63 = vmax.f32 %v184_v58, 0.0  ;;  %v219_v13 = vmax.f32 %v209_v6, 0.0 }
  0xe8   :  { %v271_v5 = vmul.f32 %v246_v40, %v215_v62  ;;  %v218_v11 = vmax.f32 %v204_v2, 0.0 }
  0xe9   :  { %v270_v1 = vmul.f32 %v241_v38, %v214_v63  ;;  %v275_v19 = vmul.f32 %v266_v18, %v219_v13 }
  0xea   :  { %v274_v16 = vmul.f32 %v261_v15, %v218_v11 }
  0xeb   :  { %v277_v7 = vadd.f32 %v276_v61, %v270_v1 }
  0xed   :  { %v278_v10 = vadd.f32 %v277_v7, %v271_v5 }
  0xef   :  { %v279_v14 = vadd.f32 %v278_v10, %v272_v9 }
  0xf1   :  { %v280_v17 = vadd.f32 %v279_v14, %v273_v12 }
  0xf3   :  { %v281_v20 = vadd.f32 %v280_v17, %v274_v16 }
  0xf5   :  { %v282_v21 = vadd.f32 %v281_v20, %v275_v19 }
  0xf7   :  { %v283_v22 = vrot.slane %v282_v21, 4 }
  0xf9   :  { %v284_v23 = vadd.f32 %v283_v22, %v282_v21 }
  0xfb   :  { %v285_v24 = vrot.slane %v284_v23, 2 }
  0xfd   :  { %v286_v25 = vadd.f32 %v285_v24, %v284_v23 }
  0xff   :  { %v287_v26 = vrot.slane %v286_v25, 1 }
 0x101   :  { %v288_v28 = vadd.f32 %v287_v26, %v286_v25 }
 0x103   :  { %v291_v29 = vadd.f32 %v290_v27, %v288_v28 }
 0x105   :  { %364 = vtanh.f32 %v291_v29 }
 0x10f   :  { %v365_v30 = vpop.eup %364 }
 0x110   :  { %293 = vst [vmem:[#allocation3] sm:$0x1] %v365_v30 }
 0x111   :  { %377 = shalt.err (!%p374_p4)
}
 0x112   :  { %s378_s4 = scalar_lea.hbm %s534_s5, 16 }
 0x113   :  { %p379_p5 = scmp.ne.s32.totalorder %s534_s5, %s378_s4  ;;  %p382_p6 = scmp.lt.u32.totalorder %s378_s4, %s534_s5 }
 0x115   :  { %p384_p7 = pnand %p382_p6, %p379_p5 }
 0x117   :  { %387 = shalt.err (!%p384_p7)
}
 0x118   :  { %303 = dma.vmem_to_hbm [thread:$0]  %s301_s22, 16, %s534_s5, [#allocation4]  }
 0x119   :  { %388 = dma.done.wait [#allocation4], 16  }
 0x11a   :  { %389 = vsyncadd [#allocation4], 4294967280 }
 0x11b   :  { %307 = vsyncpa [#allocation4], 1 }

</bundles_post_ra>
